<compile_context>
chip_gen: v6e
topology: v6e:2x2x1
jax: 0.10.0
libtpu: 0.0.40
codegen_flags: <defaults>
</compile_context>

<pallas_src>
import functools

import jax
import jax.numpy as jnp
from jax.experimental import pallas as pl
from jax.experimental.pallas import tpu as pltpu


def _round_up(n, m):
    return ((n + m - 1) // m) * m


# --------------------------------------------------------------------------- #
# Kernels
# --------------------------------------------------------------------------- #

def _ff_resident_kernel(x_ref, w1_ref, bab_ref, w2_ref, b2_ref, o_ref):
    """Weights resident in VMEM; full hidden dim processed per row tile."""
    bab = bab_ref[...]                                   # (3, Hp) f32: b1, alpha, inv_beta
    h = jnp.dot(x_ref[...], w1_ref[...], preferred_element_type=jnp.float32)
    h = h + bab[0:1, :]
    s = jnp.sin(h * bab[1:2, :])
    act = h + bab[2:3, :] * (s * s)
    y = jnp.dot(act.astype(w2_ref.dtype), w2_ref[...],
                preferred_element_type=jnp.float32)
    o_ref[...] = (y + b2_ref[...]).astype(o_ref.dtype)


def _ff_chunked_kernel(x_ref, w1_ref, bab_ref, w2_ref, b2_ref, o_ref, acc_ref):
    """Hidden dim split into chunks (grid axis 1); f32 accumulator in VMEM."""
    j = pl.program_id(1)

    @pl.when(j == 0)
    def _():
        acc_ref[...] = jnp.zeros_like(acc_ref)

    bab = bab_ref[...]                                   # (3, th) f32
    h = jnp.dot(x_ref[...], w1_ref[...], preferred_element_type=jnp.float32)
    h = h + bab[0:1, :]
    s = jnp.sin(h * bab[1:2, :])
    act = h + bab[2:3, :] * (s * s)
    acc_ref[...] += jnp.dot(act.astype(w2_ref.dtype), w2_ref[...],
                            preferred_element_type=jnp.float32)

    @pl.when(j == pl.num_programs(1) - 1)
    def _():
        o_ref[...] = (acc_ref[...] + b2_ref[...]).astype(o_ref.dtype)


# --------------------------------------------------------------------------- #
# Parameter preparation (padding / packing hoisted out of the per-call path)
# --------------------------------------------------------------------------- #

def prepare_params(w1, b1, alpha, beta, w2, b2, *, weight_dtype=None):
    """Pad & pack parameters once. alpha/beta are post-exp (logscale applied).

    Padding is mathematically inert: zero weight rows/cols, zero bias/alpha,
    inv_beta padded with 0 (so padded hidden channels contribute exactly 0).
    """
    f32 = jnp.float32
    D, H = w1.shape
    Dout = w2.shape[1]
    Dp = _round_up(D, 128)
    Hp = _round_up(H, 512)           # multiple of 512 keeps hidden chunks MXU-wide
    Doutp = _round_up(Dout, 128)

    wdt = jnp.dtype(weight_dtype) if weight_dtype is not None else w1.dtype
    w1p = jnp.zeros((Dp, Hp), wdt).at[:D, :H].set(w1.astype(wdt))
    w2p = jnp.zeros((Hp, Doutp), wdt).at[:H, :Dout].set(w2.astype(wdt))

    bab = jnp.zeros((3, Hp), f32)
    bab = bab.at[0, :H].set(b1.astype(f32))
    bab = bab.at[1, :H].set(alpha.astype(f32))
    bab = bab.at[2, :H].set(1.0 / (beta.astype(f32) + 1e-9))   # hoisted divide

    b2p = jnp.zeros((1, Doutp), f32).at[:, :Dout].set(b2.astype(f32))
    return w1p, bab, w2p, b2p


# --------------------------------------------------------------------------- #
# Geometry helpers
# --------------------------------------------------------------------------- #

def _vmem_budget():
    """Generation-aware per-kernel VMEM budget (bytes)."""
    try:
        cap = int(pltpu.get_tpu_info().vmem_capacity_bytes)
    except Exception:
        cap = 64 << 20           # conservative: valid on every generation
    return int(cap * 0.8)        # ~51 MiB on v7x (64), ~102 MiB on v5e/v6e (128)


def _resident_bytes(tm, Dp, Hp, Doutp, xb, wb, ob):
    return (2 * tm * Dp * xb                       # x tiles (double-buffered)
            + 2 * tm * Doutp * ob                  # out tiles
            + 2 * (Dp * Hp + Hp * Doutp) * wb      # resident weights (2 bufs)
            + 2 * (3 * Hp + Doutp) * 4             # packed bias/alpha, b2
            + 3 * tm * Hp * 4 + tm * Hp * wb)      # h / snake / act intermediates


def _chunked_bytes(tm, th, Dp, Doutp, xb, wb, ob):
    return (2 * tm * Dp * xb
            + 2 * tm * Doutp * ob
            + 2 * (Dp * th + th * Doutp) * wb      # per-chunk weight tiles
            + 2 * (3 * th + Doutp) * 4
            + tm * Doutp * 4                       # f32 accumulator
            + 3 * tm * th * 4 + tm * th * wb)


# --------------------------------------------------------------------------- #
# Wrapper
# --------------------------------------------------------------------------- #

@functools.partial(jax.jit, static_argnames=("out_features", "tm", "th"))
def feed_forward(x, w1p, bab, w2p, b2p, *, out_features, tm=None, th=None):
    """x: (B, T, C) with C = in_features. Returns (B, T, out_features)."""
    B, T, D = x.shape
    Dp, Hp = w1p.shape
    Doutp = w2p.shape[1]
    Dout = out_features
    M = B * T

    # bf16 (or narrower) weights: feed the MXU matching-narrow x operands.
    x_mm_dtype = w1p.dtype if w1p.dtype.itemsize < x.dtype.itemsize else x.dtype
    xb = jnp.dtype(x_mm_dtype).itemsize
    wb = w1p.dtype.itemsize
    ob = x.dtype.itemsize
    sub = max(8, 32 // xb)                 # dtype-aware sublane minimum

    budget = _vmem_budget()

    # ---- row tile ----
    m_cap = _round_up(M, sub)
    tm_eff = min(_round_up(tm, sub) if tm else 512, m_cap)

    def fits_res(t):
        return _resident_bytes(t, Dp, Hp, Doutp, xb, wb, ob) <= budget

    while tm_eff > sub and not fits_res(tm_eff):
        tm_eff = max(sub, _round_up(tm_eff // 2, sub))

    force_chunked = (th is not None) and (th < Hp)
    resident = (not force_chunked) and fits_res(tm_eff)

    th_eff = Hp
    if not resident:
        if th is not None and Hp % th == 0 and th % 128 == 0:
            th_eff = min(th, Hp)
        else:
            th_eff = 1024 if Hp % 1024 == 0 else 512
            th_eff = min(th_eff, Hp)

        def fits_ch(t, c):
            return _chunked_bytes(t, c, Dp, Doutp, xb, wb, ob) <= budget

        while th_eff > 512 and not fits_ch(tm_eff, th_eff) and Hp % (th_eff // 2) == 0:
            th_eff //= 2
        while tm_eff > sub and not fits_ch(tm_eff, th_eff):
            tm_eff = max(sub, _round_up(tm_eff // 2, sub))

    # v7x has 2 TensorCores: make sure the "parallel" rows axis has >= 2 tiles.
    if M > sub and _round_up(M, tm_eff) // tm_eff < 2:
        tm_eff = max(sub, _round_up(-(-M // 2), sub))

    Mp = _round_up(M, tm_eff)

    # ---- input padding (skipped when already aligned) ----
    x2 = x.reshape(M, D)
    if (Mp, Dp) != (M, D):
        x2 = jnp.zeros((Mp, Dp), x.dtype).at[:M, :D].set(x2)
    if x2.dtype != x_mm_dtype:
        x2 = x2.astype(x_mm_dtype)

    if resident:
        est = _resident_bytes(tm_eff, Dp, Hp, Doutp, xb, wb, ob)
        vlim = int(min(max(est * 1.25, 32 << 20), budget))
        out = pl.pallas_call(
            _ff_resident_kernel,
            out_shape=jax.ShapeDtypeStruct((Mp, Doutp), x.dtype),
            grid_spec=pltpu.PrefetchScalarGridSpec(
                num_scalar_prefetch=0,
                grid=(Mp // tm_eff,),
                in_specs=[
                    pl.BlockSpec((tm_eff, Dp), lambda i: (i, 0)),     # x rows
                    pl.BlockSpec((Dp, Hp), lambda i: (0, 0)),         # W1 (resident)
                    pl.BlockSpec((3, Hp), lambda i: (0, 0)),          # b1/alpha/inv_beta
                    pl.BlockSpec((Hp, Doutp), lambda i: (0, 0)),      # W2 (resident)
                    pl.BlockSpec((1, Doutp), lambda i: (0, 0)),       # b2
                ],
                out_specs=pl.BlockSpec((tm_eff, Doutp), lambda i: (i, 0)),
            ),
            compiler_params=pltpu.CompilerParams(
                dimension_semantics=("parallel",),
                vmem_limit_bytes=vlim),
        )(x2, w1p, bab, w2p, b2p)
    else:
        est = _chunked_bytes(tm_eff, th_eff, Dp, Doutp, xb, wb, ob)
        vlim = int(min(max(est * 1.25, 32 << 20), budget))
        out = pl.pallas_call(
            _ff_chunked_kernel,
            out_shape=jax.ShapeDtypeStruct((Mp, Doutp), x.dtype),
            grid_spec=pltpu.PrefetchScalarGridSpec(
                num_scalar_prefetch=0,
                grid=(Mp // tm_eff, Hp // th_eff),
                in_specs=[
                    pl.BlockSpec((tm_eff, Dp), lambda i, j: (i, 0)),      # x rows
                    pl.BlockSpec((Dp, th_eff), lambda i, j: (0, j)),      # W1 chunk
                    pl.BlockSpec((3, th_eff), lambda i, j: (0, j)),       # b1/alpha/inv_beta
                    pl.BlockSpec((th_eff, Doutp), lambda i, j: (j, 0)),   # W2 chunk
                    pl.BlockSpec((1, Doutp), lambda i, j: (0, 0)),        # b2
                ],
                out_specs=pl.BlockSpec((tm_eff, Doutp), lambda i, j: (i, 0)),
                scratch_shapes=[pltpu.VMEM((tm_eff, Doutp), jnp.float32)],
            ),
            compiler_params=pltpu.CompilerParams(
                dimension_semantics=("parallel", "arbitrary"),
                vmem_limit_bytes=vlim),
        )(x2, w1p, bab, w2p, b2p)

    if (Mp, Doutp) != (M, Dout):
        out = out[:M, :Dout]
    return out.reshape(B, T, Dout)


# --------------------------------------------------------------------------- #
# Init + pure-JAX reference
# --------------------------------------------------------------------------- #

def init_params(key, in_features, out_features, dtype=jnp.float32):
    """Deterministic init mirroring the PyTorch module's parameter shapes."""
    hidden = in_features * 4
    k1, k2, k3, k4 = jax.random.split(key, 4)

    lim1 = 1.0 / (in_features ** 0.5)
    w1 = jax.random.uniform(k1, (in_features, hidden), dtype, -lim1, lim1)
    b1 = jax.random.uniform(k2, (hidden,), dtype, -lim1, lim1)

    lim2 = 1.0 / (hidden ** 0.5)
    w2 = jax.random.uniform(k3, (hidden, out_features), dtype, -lim2, lim2)
    b2 = jax.random.uniform(k4, (out_features,), dtype, -lim2, lim2)

    # SnakeBeta params: alpha_logscale=True -> stored as zeros, used as exp(.)=1.
    alpha = jnp.exp(jnp.zeros((hidden,), jnp.float32))
    beta = jnp.exp(jnp.zeros((hidden,), jnp.float32))
    return w1, b1, alpha, beta, w2, b2


def reference_forward(x, w1, b1, alpha, beta, w2, b2, weight_dtype=None):
    """Pure-JAX reference of the PyTorch forward (dropout = identity)."""
    f32 = jnp.float32
    wdt = jnp.dtype(weight_dtype) if weight_dtype is not None else w1.dtype
    xf = x
    if wdt.itemsize < x.dtype.itemsize:
        xf = x.astype(wdt)
    xf = xf.astype(f32)
    w1f = w1.astype(wdt).astype(f32)
    w2f = w2.astype(wdt).astype(f32)
    h = jnp.einsum("btd,dh->bth", xf, w1f) + b1.astype(f32)
    act = h + (1.0 / (beta.astype(f32) + 1e-9)) * jnp.sin(h * alpha.astype(f32)) ** 2
    act = act.astype(wdt).astype(f32)
    y = jnp.einsum("bth,ho->bto", act, w2f) + b2.astype(f32)
    return y.astype(x.dtype)


if __name__ == "__main__":
    key = jax.random.PRNGKey(0)

    # Test 1: small shapes, auto geometry (resident-weights path).
    B, T, in_features, out_features = 2, 8, 16, 16
    kx, kp, key = jax.random.split(key, 3)
    x = jax.random.normal(kx, (B, T, in_features), jnp.float32)
    raw = init_params(kp, in_features, out_features)
    w1p, bab, w2p, b2p = prepare_params(*raw)
    y = jax.block_until_ready(feed_forward(x, w1p, bab, w2p, b2p,
                                           out_features=out_features))
    y_ref = reference_forward(x, *raw)
    assert y.shape == (B, T, out_features)
    assert jnp.allclose(y, y_ref, atol=1e-4, rtol=1e-4), "mismatch vs reference (1)"

    # Test 2: non-aligned feature dims + forced hidden-chunked path (multi-step grid).
    B, T, in_features, out_features = 2, 8, 48, 24
    kx, kp, key = jax.random.split(key, 3)
    x = jax.random.normal(kx, (B, T, in_features), jnp.float32)
    raw = init_params(kp, in_features, out_features)
    w1p, bab, w2p, b2p = prepare_params(*raw)
    y = jax.block_until_ready(feed_forward(x, w1p, bab, w2p, b2p,
                                           out_features=out_features, tm=8, th=256))
    y_ref = reference_forward(x, *raw)
    assert y.shape == (B, T, out_features)
    assert jnp.allclose(y, y_ref, atol=1e-4, rtol=1e-4), "mismatch vs reference (2)"

    # Test 3: bf16 weights on the MXU (f32 accumulation), resident path.
    B, T, in_features, out_features = 2, 64, 128, 128
    kx, kp = jax.random.split(key)
    x = jax.random.normal(kx, (B, T, in_features), jnp.float32)
    raw = init_params(kp, in_features, out_features)
    w1p, bab, w2p, b2p = prepare_params(*raw, weight_dtype=jnp.bfloat16)
    y = jax.block_until_ready(feed_forward(x, w1p, bab, w2p, b2p,
                                           out_features=out_features))
    y_ref = reference_forward(x, *raw, weight_dtype=jnp.bfloat16)
    assert y.shape == (B, T, out_features)
    assert jnp.allclose(y, y_ref, atol=2e-2, rtol=2e-2), "mismatch vs reference (3)"

    print("KERNEL_OK")
</pallas_src>

<mosaic_0001>
module attributes {stable_mosaic.version = 11 : i64} {
  func.func @_ff_resident_kernel(%arg0: i32, %arg1: memref<8x128xf32, #tpu.memory_space<vmem>>, %arg2: memref<128x512xf32, #tpu.memory_space<vmem>>, %arg3: memref<3x512xf32, #tpu.memory_space<vmem>>, %arg4: memref<512x128xf32, #tpu.memory_space<vmem>>, %arg5: memref<1x128xf32, #tpu.memory_space<vmem>>, %arg6: memref<8x128xf32, #tpu.memory_space<vmem>>) attributes {dimension_semantics = [#tpu.dimension_semantics<parallel>], iteration_bounds = array<i64: 2>, scalar_prefetch = 0 : i64, scratch_operands = 0 : i64, tpu.core_type = #tpu.core_type<tc>, window_params = [{transform_indices = @transform_0, window_bounds = array<i64: 8, 128>}, {pipeline_mode = #tpu.pipeline_mode<synchronous>, transform_indices = @transform_1, window_bounds = array<i64: 128, 512>}, {pipeline_mode = #tpu.pipeline_mode<synchronous>, transform_indices = @transform_2, window_bounds = array<i64: 3, 512>}, {pipeline_mode = #tpu.pipeline_mode<synchronous>, transform_indices = @transform_3, window_bounds = array<i64: 512, 128>}, {pipeline_mode = #tpu.pipeline_mode<synchronous>, transform_indices = @transform_4, window_bounds = array<i64: 1, 128>}, {transform_indices = @transform_5, window_bounds = array<i64: 8, 128>}]} {
    %c0 = arith.constant 0 : index
    %c0_0 = arith.constant 0 : index
    %0 = vector.load %arg3[%c0, %c0_0] : memref<3x512xf32, #tpu.memory_space<vmem>>, vector<3x512xf32>
    %c0_1 = arith.constant 0 : index
    %c0_2 = arith.constant 0 : index
    %1 = vector.load %arg1[%c0_1, %c0_2] : memref<8x128xf32, #tpu.memory_space<vmem>>, vector<8x128xf32>
    %c0_3 = arith.constant 0 : index
    %c0_4 = arith.constant 0 : index
    %2 = vector.load %arg2[%c0_3, %c0_4] : memref<128x512xf32, #tpu.memory_space<vmem>>, vector<128x512xf32>
    %cst = arith.constant dense<0.000000e+00> : vector<8x512xf32>
    %3 = tpu.matmul %1, %2, %cst {dimension_numbers = #tpu.dot_dimension_numbers<[1], [0], [0], [1], [0, 0, 1, 1], [], []>} : vector<8x128xf32>, vector<128x512xf32>, vector<8x512xf32> -> vector<8x512xf32>
    %4 = vector.extract_strided_slice %0 {offsets = [0, 0], sizes = [1, 512], strides = [1, 1]} : vector<3x512xf32> to vector<1x512xf32>
    %5 = vector.broadcast %4 : vector<1x512xf32> to vector<8x512xf32>
    %6 = arith.addf %3, %5 : vector<8x512xf32>
    %7 = vector.extract_strided_slice %0 {offsets = [1, 0], sizes = [1, 512], strides = [1, 1]} : vector<3x512xf32> to vector<1x512xf32>
    %8 = vector.broadcast %7 : vector<1x512xf32> to vector<8x512xf32>
    %9 = arith.mulf %6, %8 : vector<8x512xf32>
    %10 = math.sin %9 : vector<8x512xf32>
    %11 = vector.extract_strided_slice %0 {offsets = [2, 0], sizes = [1, 512], strides = [1, 1]} : vector<3x512xf32> to vector<1x512xf32>
    %12 = arith.mulf %10, %10 : vector<8x512xf32>
    %13 = vector.broadcast %11 : vector<1x512xf32> to vector<8x512xf32>
    %14 = arith.mulf %13, %12 : vector<8x512xf32>
    %15 = arith.addf %6, %14 : vector<8x512xf32>
    %c0_5 = arith.constant 0 : index
    %c0_6 = arith.constant 0 : index
    %16 = vector.load %arg4[%c0_5, %c0_6] : memref<512x128xf32, #tpu.memory_space<vmem>>, vector<512x128xf32>
    %cst_7 = arith.constant dense<0.000000e+00> : vector<8x128xf32>
    %17 = tpu.matmul %15, %16, %cst_7 {dimension_numbers = #tpu.dot_dimension_numbers<[1], [0], [0], [1], [0, 0, 1, 1], [], []>} : vector<8x512xf32>, vector<512x128xf32>, vector<8x128xf32> -> vector<8x128xf32>
    %c0_8 = arith.constant 0 : index
    %c0_9 = arith.constant 0 : index
    %18 = vector.load %arg5[%c0_8, %c0_9] : memref<1x128xf32, #tpu.memory_space<vmem>>, vector<1x128xf32>
    %19 = vector.broadcast %18 : vector<1x128xf32> to vector<8x128xf32>
    %20 = arith.addf %17, %19 : vector<8x128xf32>
    %c0_10 = arith.constant 0 : index
    %c0_11 = arith.constant 0 : index
    %21 = vector.load %arg6[%c0_10, %c0_11] : memref<8x128xf32, #tpu.memory_space<vmem>>, vector<8x128xf32>
    tpu.vector_store %arg6[%c0_10, %c0_11], %20 {strides = array<i32>} : memref<8x128xf32, #tpu.memory_space<vmem>>, vector<8x128xf32>,
    return
  }
  func.func @transform_0(%arg0: i32) -> (i32, i32) {
    %c0_i32 = arith.constant 0 : i32
    %c0_i32_0 = arith.constant 0 : i32
    return %arg0, %c0_i32 : i32, i32
  }
  func.func @transform_1(%arg0: i32) -> (i32, i32) {
    %c0_i32 = arith.constant 0 : i32
    %c0_i32_0 = arith.constant 0 : i32
    %c0_i32_1 = arith.constant 0 : i32
    return %c0_i32, %c0_i32_0 : i32, i32
  }
  func.func @transform_2(%arg0: i32) -> (i32, i32) {
    %c0_i32 = arith.constant 0 : i32
    %c0_i32_0 = arith.constant 0 : i32
    %c0_i32_1 = arith.constant 0 : i32
    return %c0_i32, %c0_i32_0 : i32, i32
  }
  func.func @transform_3(%arg0: i32) -> (i32, i32) {
    %c0_i32 = arith.constant 0 : i32
    %c0_i32_0 = arith.constant 0 : i32
    %c0_i32_1 = arith.constant 0 : i32
    return %c0_i32, %c0_i32_0 : i32, i32
  }
  func.func @transform_4(%arg0: i32) -> (i32, i32) {
    %c0_i32 = arith.constant 0 : i32
    %c0_i32_0 = arith.constant 0 : i32
    %c0_i32_1 = arith.constant 0 : i32
    return %c0_i32, %c0_i32_0 : i32, i32
  }
  func.func @transform_5(%arg0: i32) -> (i32, i32) {
    %c0_i32 = arith.constant 0 : i32
    %c0_i32_0 = arith.constant 0 : i32
    return %arg0, %c0_i32 : i32, i32
  }
}

</mosaic_0001>

<bundles_post_ra>
// kernel: feed_forward.1
= control target key start
LH: loop header
LB: loop body
LE: loop exit
PB: predicated region body
PF: predicated region fallthrough
CT: control target
= control target key end

     0   :  { %10 = vsyncpa [#allocation3], 0  ;;  %s2031_s0 = inlined_call_operand.vmem [shape: f32[16,128], index: 0, kind: input, shape index: {}]   ;;  %s2032_s1 = inlined_call_operand.hbm [shape: f32[128,512], index: 1, kind: input, shape index: {}]   ;;  %s2033_s2 = inlined_call_operand.vmem [shape: f32[3,512], index: 2, kind: input, shape index: {}]   ;;  %s2034_s3 = inlined_call_operand.hbm [shape: f32[512,128], index: 3, kind: input, shape index: {}]   ;;  %s2035_s4 = inlined_call_operand.vmem [shape: f32[1,128], index: 4, kind: input, shape index: {}]   ;;  %s2036_s5 = inlined_call_operand.vmem [shape: f32[16,128], index: 5, kind: output, shape index: {}]  }
   0x1   :  { %11 = vsyncpa [#allocation5], 0  ;;  %s1573_s18 = smov 0  }
   0x2 LB: > { %s1530_s19 = smov [#allocation2]   ;;  %s1579_s21 = sadd.s32 4294967295, %s1528_s18   ;;  %s1528_s18 = sphi %s1573_s18, %s17_s18  }
   0x3   : > { %s170_s20 = sshll.u32 %s1530_s19, 4  ;;  %p1290_p0 = scmp.ge.s32.totalorder %s1528_s18, 1  ;;  %s171_s20 = int_to_ptr.vmem [resolvable:$true] %s170_s20 }
   0x4   : > { %p158_p1 = scmp.lt.s32.totalorder %s1528_s18, 3  ;;  %p1419_p3 = scmp.eq.s32.totalorder %s1579_s21, 0 }
   0x5   : > { %s1531_s23 = smov [#allocation4]   ;;  %s1473_s26 = scalar_lea.vmem %s171_s20, 8192 }
   0x6   : > { %p1583_p2 = pnand %p1290_p0, %p158_p1  ;;  %s186_s24 = sshll.u32 %s1531_s23, 4  ;;  %s187_s24 = int_to_ptr.vmem [resolvable:$true] %s186_s24 }
   0x7   : > { %p1474_p7 = scmp.ne.s32.totalorder %s171_s20, %s1473_s26  ;;  %p1481_p10 = scmp.lt.s32.totalorder %s171_s20, %s171_s20 }
   0x8   : > { %p1412_p4 = pneg %p1583_p2  ;;  %p1482_p11 = scmp.lt.s32.totalorder %s1473_s26, %s1473_s26 }
   0xa   : > { %p1592_p5 = pnand %p1419_p3, %p1412_p4  ;;  %p1483_p12 = por %p1482_p11, %p1481_p10 }
   0xc   : > { %p1464_p6 = pneg %p1592_p5 }
   0xe   : > { %p1476_p8 = pnand %p1474_p7, %p1464_p6 }
  0x10   : > { %p1477_p9 = pneg %p1476_p8 }
  0x12   : > { %p1484_p13 = pnand %p1483_p12, %p1477_p9 }
  0x14   : > { %1487 = shalt.err (!%p1484_p13)
}
  0x15   : > { %s1532_s27 = smov 512   ;;  %s1533_s28 = smov 32  }
  0x16   : > { %1415 = dma.hbm_to_vmem [thread:$0]  (!%p1592_p5), %s2032_s1, 8192, %s171_s20, [#allocation3], %s1532_s27, %s1532_s27, %s1533_s28  }
  0x17   : > { %s1499_s6 = scalar_lea.vmem %s187_s24, 8192  ;;  %p1507_p7 = scmp.lt.s32.totalorder %s187_s24, %s187_s24 }
  0x18   : > { %p1500_p0 = scmp.ne.s32.totalorder %s187_s24, %s1499_s6  ;;  %p1508_p8 = scmp.lt.s32.totalorder %s1499_s6, %s1499_s6 }
  0x1a   : > { %p1502_p1 = pnand %p1500_p0, %p1464_p6  ;;  %p1509_p10 = por %p1508_p8, %p1507_p7 }
  0x1c   : > { %p1503_p4 = pneg %p1502_p1 }
  0x1e   : > { %p1510_p9 = pnand %p1509_p10, %p1503_p4 }
  0x20   : > { %1513 = shalt.err (!%p1510_p9)
}
  0x21   : > { %s1534_s7 = smov 128   ;;  %s1535_s8 = smov 8  }
  0x22   : > { %1418 = dma.hbm_to_vmem [thread:$0]  (!%p1592_p5), %s2034_s3, 8192, %s187_s24, [#allocation5], %s1534_s7, %s1534_s7, %s1535_s8  }
  0x23   : > { %212 = sbr.rel (%p1583_p2) target bundleno = 610 (0x262), region = 40 }
  0x28   : > { %1519 = dma.done.wait (%p1419_p3), [#allocation3], 8192  }
  0x29   : > { %1521 = vsyncadd (%p1419_p3), [#allocation3], 4294959104 }
  0x2a   : > { %1523 = dma.done.wait (%p1419_p3), [#allocation5], 8192  }
  0x2b   : > { %1525 = vsyncadd (%p1419_p3), [#allocation5], 4294959104  ;;  %v1536_v0 = vmov 0.0   ;;  %v314_v1 = vld [vmem:[#allocation2 + $0x1e8] sm:$0xff]  ;;  %v316_v2 = vld [vmem:[#allocation2 + $0x1f8] sm:$0xff]  ;;  %p242_p2 = scmp.lt.s32.totalorder %s1579_s21, 1 }
  0x2c   : > { %419 = vmatprep.mubr.f32.mxu0 %v1536_v0  ;;  %490 = vmatprep.mubr.f32.mxu1 %v1536_v0  ;;  %v313_v3 = vld [vmem:[#allocation2 + $0x1e0] sm:$0xff]  ;;  %v315_v4 = vld [vmem:[#allocation2 + $0x1f0] sm:$0xff]  ;;  %v310_v5 = vld [vmem:[#allocation2 + $0x1c8] sm:$0xff] }
  0x2d   : > { %355 = vmatprep.subr.mxu0 %v314_v1  ;;  %426 = vmatprep.subr.mxu1 %v316_v2  ;;  %v312_v6 = vld [vmem:[#allocation2 + $0x1d8] sm:$0xff]  ;;  %v309_v7 = vld [vmem:[#allocation2 + $0x1c0] sm:$0xff]  ;;  %v311_v8 = vld [vmem:[#allocation2 + $0x1d0] sm:$0xff]  ;;  %s2048_s21 = smov (!%p242_p2, %s1579_s21), 1  ;;  %v319_v2 = vlaneseq }
  0x2e   : > { %356 = vmatpush1.msra.mxu0 %v313_v3  ;;  %427 = vmatpush1.msra.mxu1 %v315_v4  ;;  %v306_v9 = vld [vmem:[#allocation2 + $0x1a8] sm:$0xff]  ;;  %v308_v10 = vld [vmem:[#allocation2 + $0x1b8] sm:$0xff]  ;;  %v305_v11 = vld [vmem:[#allocation2 + $0x1a0] sm:$0xff]  ;;  %s1297_s11 = sshll.u32 %s2048_s21, 3 }
  0x2f   : > { %357 = vmatprep.subr.mxu0 %v310_v5  ;;  %428 = vmatprep.subr.mxu1 %v312_v6  ;;  %v307_v12 = vld [vmem:[#allocation2 + $0x1b0] sm:$0xff]  ;;  %v302_v13 = vld [vmem:[#allocation2 + $0x188] sm:$0xff]  ;;  %v304_v14 = vld [vmem:[#allocation2 + $0x198] sm:$0xff]  ;;  %s245_s14 = scalar_lea.vmem %s2031_s0, %s1297_s11  ;;  %v1636_v3 = vshrl.u32 %v319_v2, 7  ;;  %s249_s29 = scalar_lea.vmem %s2036_s5, %s1297_s11 }
  0x30   : > { %358 = vmatpush1.msra.mxu0 %v309_v7  ;;  %429 = vmatpush1.msra.mxu1 %v311_v8  ;;  %v301_v15 = vld [vmem:[#allocation2 + $0x180] sm:$0xff]  ;;  %v303_v16 = vld [vmem:[#allocation2 + $0x190] sm:$0xff]  ;;  %v298_v17 = vld [vmem:[#allocation2 + $0x168] sm:$0xff] }
  0x31   : > { %359 = vmatprep.subr.mxu0 %v306_v9  ;;  %430 = vmatprep.subr.mxu1 %v308_v10  ;;  %v300_v18 = vld [vmem:[#allocation2 + $0x178] sm:$0xff]  ;;  %v297_v19 = vld [vmem:[#allocation2 + $0x160] sm:$0xff]  ;;  %v299_v20 = vld [vmem:[#allocation2 + $0x170] sm:$0xff]  ;;  %v1639_v4 = vsub.s32 0, %v1636_v3  ;;  %v1647_v6 = vsub.s32 1, %v1636_v3  ;;  %v325_v8 = vsub.s32 4, %v1636_v3 }
  0x32   : > { %360 = vmatpush1.msra.mxu0 %v305_v11  ;;  %431 = vmatpush1.msra.mxu1 %v307_v12  ;;  %v294_v21 = vld [vmem:[#allocation2 + $0x148] sm:$0xff]  ;;  %v296_v22 = vld [vmem:[#allocation2 + $0x158] sm:$0xff]  ;;  %v293_v23 = vld [vmem:[#allocation2 + $0x140] sm:$0xff] }
  0x33   : > { %361 = vmatprep.subr.mxu0 %v302_v13  ;;  %432 = vmatprep.subr.mxu1 %v304_v14  ;;  %v295_v24 = vld [vmem:[#allocation2 + $0x150] sm:$0xff]  ;;  %v290_v25 = vld [vmem:[#allocation2 + $0x128] sm:$0xff]  ;;  %v292_v26 = vld [vmem:[#allocation2 + $0x138] sm:$0xff] }
  0x34   : > { %362 = vmatpush1.msra.mxu0 %v301_v15  ;;  %433 = vmatpush1.msra.mxu1 %v303_v16  ;;  %v289_v27 = vld [vmem:[#allocation2 + $0x120] sm:$0xff]  ;;  %v291_v28 = vld [vmem:[#allocation2 + $0x130] sm:$0xff]  ;;  %v286_v29 = vld [vmem:[#allocation2 + $0x108] sm:$0xff]  ;;  %v503_v16 = vsub.s32 5, %v1636_v3 }
  0x35   : > { %363 = vmatprep.subr.mxu0 %v298_v17  ;;  %434 = vmatprep.subr.mxu1 %v300_v18  ;;  %v288_v30 = vld [vmem:[#allocation2 + $0x118] sm:$0xff]  ;;  %v285_v31 = vld [vmem:[#allocation2 + $0x100] sm:$0xff]  ;;  %v287_v32 = vld [vmem:[#allocation2 + $0x110] sm:$0xff] }
  0x36   : > { %364 = vmatpush1.msra.mxu0 %v297_v19  ;;  %435 = vmatpush1.msra.mxu1 %v299_v20  ;;  %v282_v33 = vld [vmem:[#allocation2 + $0xe8] sm:$0xff]  ;;  %v284_v34 = vld [vmem:[#allocation2 + $0xf8] sm:$0xff]  ;;  %v281_v35 = vld [vmem:[#allocation2 + $0xe0] sm:$0xff] }
  0x37   : > { %365 = vmatprep.subr.mxu0 %v294_v21  ;;  %436 = vmatprep.subr.mxu1 %v296_v22  ;;  %v283_v36 = vld [vmem:[#allocation2 + $0xf0] sm:$0xff]  ;;  %v278_v37 = vld [vmem:[#allocation2 + $0xc8] sm:$0xff]  ;;  %v280_v38 = vld [vmem:[#allocation2 + $0xd8] sm:$0xff] }
  0x38   : > { %366 = vmatpush1.msra.mxu0 %v293_v23  ;;  %437 = vmatpush1.msra.mxu1 %v295_v24  ;;  %v277_v39 = vld [vmem:[#allocation2 + $0xc0] sm:$0xff]  ;;  %v279_v40 = vld [vmem:[#allocation2 + $0xd0] sm:$0xff]  ;;  %v274_v41 = vld [vmem:[#allocation2 + $0xa8] sm:$0xff] }
  0x39   : > { %367 = vmatprep.subr.mxu0 %v290_v25  ;;  %438 = vmatprep.subr.mxu1 %v292_v26  ;;  %v276_v42 = vld [vmem:[#allocation2 + $0xb8] sm:$0xff]  ;;  %v273_v43 = vld [vmem:[#allocation2 + $0xa0] sm:$0xff]  ;;  %v275_v44 = vld [vmem:[#allocation2 + $0xb0] sm:$0xff] }
  0x3a   : > { %368 = vmatpush1.msra.mxu0 %v289_v27  ;;  %439 = vmatpush1.msra.mxu1 %v291_v28  ;;  %v270_v45 = vld [vmem:[#allocation2 + $0x88] sm:$0xff]  ;;  %v272_v46 = vld [vmem:[#allocation2 + $0x98] sm:$0xff]  ;;  %v269_v47 = vld [vmem:[#allocation2 + $0x80] sm:$0xff] }
  0x3b   : > { %369 = vmatprep.subr.mxu0 %v286_v29  ;;  %440 = vmatprep.subr.mxu1 %v288_v30  ;;  %v271_v48 = vld [vmem:[#allocation2 + $0x90] sm:$0xff]  ;;  %v266_v49 = vld [vmem:[#allocation2 + $0x68] sm:$0xff]  ;;  %v268_v50 = vld [vmem:[#allocation2 + $0x78] sm:$0xff] }
  0x3c   : > { %370 = vmatpush1.msra.mxu0 %v285_v31  ;;  %441 = vmatpush1.msra.mxu1 %v287_v32  ;;  %v265_v51 = vld [vmem:[#allocation2 + $0x60] sm:$0xff]  ;;  %v267_v52 = vld [vmem:[#allocation2 + $0x70] sm:$0xff]  ;;  %v262_v53 = vld [vmem:[#allocation2 + $0x48] sm:$0xff] }
  0x3d   : > { %371 = vmatprep.subr.mxu0 %v282_v33  ;;  %442 = vmatprep.subr.mxu1 %v284_v34  ;;  %v264_v54 = vld [vmem:[#allocation2 + $0x58] sm:$0xff]  ;;  %v261_v55 = vld [vmem:[#allocation2 + $0x40] sm:$0xff]  ;;  %v263_v56 = vld [vmem:[#allocation2 + $0x50] sm:$0xff] }
  0x3e   : > { %372 = vmatpush1.msra.mxu0 %v281_v35  ;;  %443 = vmatpush1.msra.mxu1 %v283_v36  ;;  %v258_v57 = vld [vmem:[#allocation2 + $0x28] sm:$0xff]  ;;  %v260_v58 = vld [vmem:[#allocation2 + $0x38] sm:$0xff]  ;;  %v257_v59 = vld [vmem:[#allocation2 + $0x20] sm:$0xff] }
  0x3f   : > { %373 = vmatprep.subr.mxu0 %v278_v37  ;;  %444 = vmatprep.subr.mxu1 %v280_v38  ;;  %v259_v60 = vld [vmem:[#allocation2 + $0x30] sm:$0xff]  ;;  %v254_v61 = vld [vmem:[#allocation2 + $0x8] sm:$0xff]  ;;  %v256_v62 = vld [vmem:[#allocation2 + $0x18] sm:$0xff] }
  0x40   : > { %374 = vmatpush1.msra.mxu0 %v277_v39  ;;  %445 = vmatpush1.msra.mxu1 %v279_v40  ;;  %v253_v63 = vld [vmem:[#allocation2] sm:$0xff]  ;;  %v255_v0 = vld [vmem:[#allocation2 + $0x10] sm:$0xff]  ;;  %v1652_v7 = vld [vmem:[%s2033_s2 + $0x8] sm:$0x77] }
  0x41   : > { %375 = vmatprep.subr.mxu0 %v274_v41  ;;  %446 = vmatprep.subr.mxu1 %v276_v42  ;;  %v252_v1 = vld [vmem:[%s245_s14] sm:$0xff]  ;;  %v330_v10 = vrot.slane %v1652_v7, %v1639_v4  ;;  %v1032_v12 = vld [vmem:[#allocation4 + $0xf8] sm:$0xff]  ;;  %v508_v14 = vrot.slane %v1652_v7, %v1647_v6  ;;  %v1031_v19 = vld [vmem:[#allocation4 + $0xf0] sm:$0xff] }
  0x42   : > { %376 = vmatpush1.msra.mxu0 %v273_v43  ;;  %447 = vmatpush1.msra.mxu1 %v275_v44  ;;  %v1644_v5 = vld [vmem:[%s2033_s2] sm:$0x77]  ;;  %v1064_v13 = vld [vmem:[#allocation4 + $0x1f8] sm:$0xff]  ;;  %v1063_v20 = vld [vmem:[#allocation4 + $0x1f0] sm:$0xff] }
  0x43   : > { %377 = vmatprep.subr.mxu0 %v270_v45  ;;  %448 = vmatprep.subr.mxu1 %v272_v46  ;;  %v322_v9 = vrot.slane %v1644_v5, %v1639_v4  ;;  %v500_v11 = vrot.slane %v1644_v5, %v1647_v6  ;;  %v326_v15 = vrot.slane %v1644_v5, %v325_v8  ;;  %v1016_v17 = vld [vmem:[#allocation4 + $0x78] sm:$0xff]  ;;  %v1015_v23 = vld [vmem:[#allocation4 + $0x70] sm:$0xff]  ;;  %v1030_v26 = vld [vmem:[#allocation4 + $0xe8] sm:$0xff] }
  0x44   : > { %378 = vmatpush1.msra.mxu0 %v269_v47  ;;  %449 = vmatpush1.msra.mxu1 %v271_v48  ;;  %v1048_v18 = vld [vmem:[#allocation4 + $0x178] sm:$0xff]  ;;  %v350_v22 = vrot.slane %v330_v10, %v1639_v4  ;;  %v1047_v24 = vld [vmem:[#allocation4 + $0x170] sm:$0xff]  ;;  %v1062_v27 = vld [vmem:[#allocation4 + $0x1e8] sm:$0xff]  ;;  %v528_v28 = vrot.slane %v508_v14, %v1647_v6  ;;  %v504_v30 = vrot.slane %v1644_v5, %v503_v16 }
  0x45   : > { %379 = vmatprep.subr.mxu0 %v266_v49  ;;  %450 = vmatprep.subr.mxu1 %v268_v50  ;;  %v342_v21 = vrot.slane %v322_v9, %v1639_v4  ;;  %v520_v25 = vrot.slane %v500_v11, %v1647_v6  ;;  %v346_v29 = vrot.slane %v326_v15, %v1639_v4  ;;  %v1014_v31 = vld [vmem:[#allocation4 + $0x68] sm:$0xff]  ;;  %v1029_v35 = vld [vmem:[#allocation4 + $0xe0] sm:$0xff]  ;;  %v1028_v42 = vld [vmem:[#allocation4 + $0xd8] sm:$0xff] }
  0x46   : > { %380 = vmatpush1.msra.mxu0 %v265_v51  ;;  %451 = vmatpush1.msra.mxu1 %v267_v52  ;;  %v1046_v32 = vld [vmem:[#allocation4 + $0x168] sm:$0xff]  ;;  %v1061_v36 = vld [vmem:[#allocation4 + $0x1e0] sm:$0xff]  ;;  %v1060_v43 = vld [vmem:[#allocation4 + $0x1d8] sm:$0xff]  ;;  %v524_v47 = vrot.slane %v504_v30, %v1647_v6 }
  0x47   : > { %381 = vmatprep.subr.mxu0 %v262_v53  ;;  %452 = vmatprep.subr.mxu1 %v264_v54  ;;  %v1013_v39 = vld [vmem:[#allocation4 + $0x60] sm:$0xff]  ;;  %v1012_v48 = vld [vmem:[#allocation4 + $0x58] sm:$0xff]  ;;  %v1027_v50 = vld [vmem:[#allocation4 + $0xd0] sm:$0xff] }
  0x48   : > { %382 = vmatpush1.msra.mxu0 %v261_v55  ;;  %453 = vmatpush1.msra.mxu1 %v263_v56  ;;  %v1045_v40 = vld [vmem:[#allocation4 + $0x160] sm:$0xff]  ;;  %v1044_v49 = vld [vmem:[#allocation4 + $0x158] sm:$0xff]  ;;  %v1059_v51 = vld [vmem:[#allocation4 + $0x1d0] sm:$0xff] }
  0x49   : > { %383 = vmatprep.subr.mxu0 %v258_v57  ;;  %454 = vmatprep.subr.mxu1 %v260_v58  ;;  %v1011_v54 = vld [vmem:[#allocation4 + $0x50] sm:$0xff]  ;;  %v1026_v58 = vld [vmem:[#allocation4 + $0xc8] sm:$0xff]  ;;  %v1025_v10 = vld [vmem:[#allocation4 + $0xc0] sm:$0xff] }
  0x4a   : > { %384 = vmatpush1.msra.mxu0 %v257_v59  ;;  %455 = vmatpush1.msra.mxu1 %v259_v60  ;;  %v1043_v55 = vld [vmem:[#allocation4 + $0x150] sm:$0xff]  ;;  %v1058_v59 = vld [vmem:[#allocation4 + $0x1c8] sm:$0xff]  ;;  %v1009_v14 = vld [vmem:[#allocation4 + $0x40] sm:$0xff] }
  0x4b   : > { %385 = vmatprep.subr.mxu0 %v254_v61  ;;  %456 = vmatprep.subr.mxu1 %v256_v62  ;;  %v1010_v62 = vld [vmem:[#allocation4 + $0x48] sm:$0xff]  ;;  %v1041_v15 = vld [vmem:[#allocation4 + $0x140] sm:$0xff] }
  0x4c   : > { %386 = vmatpush1.msra.mxu0 %v253_v63  ;;  %457 = vmatpush1.msra.mxu1 %v255_v0  ;;  %v1042_v2 = vld [vmem:[#allocation4 + $0x148] sm:$0xff] }
  0x4d   : > { %420 = vmatmul.mubr.f32.vlgmr.msra.gmra.mxu0 %v252_v1  ;;  %491 = vmatmul.mubr.f32.vlgmr.msra.gmra.mxu1 %v252_v1 }
  0x4e   : > { %1318 = vmatprep.subr.mxu0 %v1032_v12  ;;  %1353 = vmatprep.subr.mxu1 %v1064_v13  ;;  %v1057_v13 = vld [vmem:[#allocation4 + $0x1c0] sm:$0xff] }
  0x4f   : > { %1319 = vmatpush3.msra.mxu0 %v1016_v17  ;;  %1354 = vmatpush3.msra.mxu1 %v1048_v18  ;;  %v1703_v18 = vrot.slane %v1652_v7, %v325_v8 }
  0x50   : > { %1320 = vmatprep.subr.mxu0 %v1031_v19  ;;  %1355 = vmatprep.subr.mxu1 %v1063_v20 }
  0x51   : > { %1321 = vmatpush3.msra.mxu0 %v1015_v23  ;;  %1356 = vmatpush3.msra.mxu1 %v1047_v24  ;;  %v1024_v23 = vld [vmem:[#allocation4 + $0xb8] sm:$0xff] }
  0x52   : > { %1322 = vmatprep.subr.mxu0 %v1030_v26  ;;  %1357 = vmatprep.subr.mxu1 %v1062_v27  ;;  %v1056_v24 = vld [vmem:[#allocation4 + $0x1b8] sm:$0xff] }
  0x53   : > { %1323 = vmatpush3.msra.mxu0 %v1014_v31  ;;  %1358 = vmatpush3.msra.mxu1 %v1046_v32  ;;  %v354_v31 = vrot.slane %v1703_v18, %v1639_v4  ;;  %v1023_v32 = vld [vmem:[#allocation4 + $0xb0] sm:$0xff] }
  0x54   : > { %1324 = vmatprep.subr.mxu0 %v1029_v35  ;;  %1359 = vmatprep.subr.mxu1 %v1061_v36 }
  0x55   : > { %1325 = vmatpush3.msra.mxu0 %v1013_v39  ;;  %1360 = vmatpush3.msra.mxu1 %v1045_v40  ;;  %v1718_v39 = vrot.slane %v1652_v7, %v503_v16  ;;  %v1007_v40 = vld [vmem:[#allocation4 + $0x30] sm:$0xff]  ;;  %v1539_v7 = vmov 2131351028  }
  0x56   : > { %1326 = vmatprep.subr.mxu0 %v1028_v42  ;;  %1361 = vmatprep.subr.mxu1 %v1060_v43  ;;  %v1537_v43 = vmov 683565275  }
  0x57   : > { %1327 = vmatpush3.msra.mxu0 %v1012_v48  ;;  %1362 = vmatpush3.msra.mxu1 %v1044_v49  ;;  %v1538_v48 = vmov 2475754826  }
  0x58   : > { %1328 = vmatprep.subr.mxu0 %v1027_v50  ;;  %1363 = vmatprep.subr.mxu1 %v1059_v51  ;;  %v1022_v51 = vld [vmem:[#allocation4 + $0xa8] sm:$0xff] }
  0x59   : > { %1329 = vmatpush3.msra.mxu0 %v1011_v54  ;;  %1364 = vmatpush3.msra.mxu1 %v1043_v55  ;;  %v1006_v54 = vld [vmem:[#allocation4 + $0x28] sm:$0xff]  ;;  %v1540_v55 = vmov 2102212464  }
  0x5a   : > { %1330 = vmatprep.subr.mxu0 %v1026_v58  ;;  %1365 = vmatprep.subr.mxu1 %v1058_v59  ;;  %v1541_v58 = vmov 920167782  }
  0x5b   : > { %1331 = vmatpush3.msra.mxu0 %v1010_v62  ;;  %1366 = vmatpush3.msra.mxu1 %v1042_v2  ;;  %v1038_v62 = vld [vmem:[#allocation4 + $0x128] sm:$0xff] }
  0x5c   : > { %1332 = vmatprep.subr.mxu0 %v1025_v10  ;;  %1367 = vmatprep.subr.mxu1 %v1057_v13  ;;  %v1005_v10 = vld [vmem:[#allocation4 + $0x20] sm:$0xff] }
  0x5d   : > { %1333 = vmatpush3.msra.mxu0 %v1009_v14  ;;  %1368 = vmatpush3.msra.mxu1 %v1041_v15  ;;  %v1542_v14 = vmov 1326507024  }
  0x5e   : > { %1334 = vmatprep.subr.mxu0 %v1024_v23  ;;  %1369 = vmatprep.subr.mxu1 %v1056_v24  ;;  %v1004_v24 = vld [vmem:[#allocation4 + $0x18] sm:$0xff] }
 0x10d   : > { %v421_v33 = vpop.f32.mrf.mxu0  ;;  %v492_v34 = vpop.f32.mrf.mxu1 }
 0x10e   : > { %v1675_v37 = vadd.f32 %v421_v33, %v342_v21  ;;  %v1677_v38 = vadd.f32 %v492_v34, %v350_v22  ;;  %v1055_v33 = vld [vmem:[#allocation4 + $0x1b0] sm:$0xff] }
 0x10f   : > { %v423_v41 = vpop.f32.mrf.mxu0 }
 0x110   : > { %v1680_v44 = vmul.f32 %v520_v25, %v1675_v37  ;;  %v1683_v45 = vmul.f32 %v528_v28, %v1677_v38  ;;  %v1685_v46 = vadd.f32 %v423_v41, %v346_v29  ;;  %v1008_v25 = vld [vmem:[#allocation4 + $0x38] sm:$0xff]  ;;  %v1039_v41 = vld [vmem:[#allocation4 + $0x130] sm:$0xff] }
 0x111   : > { %1335 = vmatpush3.msra.mxu0 %v1008_v25  ;;  %v1040_v28 = vld [vmem:[#allocation4 + $0x138] sm:$0xff] }
 0x112   : > { %v537_v52 = vand.u32 2147483647, %v1680_v44  ;;  %v540_v53 = vand.u32 2139095040, %v1680_v44  ;;  %v745_v56 = vand.u32 2147483647, %v1683_v45  ;;  %v748_v57 = vand.u32 2139095040, %v1683_v45  ;;  %1370 = vmatpush3.msra.mxu1 %v1040_v28  ;;  %1336 = vmatprep.subr.mxu0 %v1023_v32 }
 0x113   : > { %v1693_v61 = vmul.f32 %v524_v47, %v1685_v46  ;;  %1371 = vmatprep.subr.mxu1 %v1055_v33  ;;  %1337 = vmatpush3.msra.mxu0 %v1007_v40  ;;  %v1036_v25 = vld [vmem:[#allocation4 + $0x118] sm:$0xff] }
 0x114   : > { %v541_v60 = vshrl.u32 %v540_v53, 23  ;;  %v544_v63 = vand.u32 8388607, %v537_v52  ;;  %v749_v0 = vshrl.u32 %v748_v57, 23  ;;  %v752_v1 = vand.u32 8388607, %v745_v56  ;;  %1372 = vmatpush3.msra.mxu1 %v1039_v41  ;;  %1338 = vmatprep.subr.mxu0 %v1022_v51 }
 0x115   : > { %v644_v12 = vand.u32 2139095040, %v1693_v61  ;;  %v1054_v53 = vld [vmem:[#allocation4 + $0x1a8] sm:$0xff]  ;;  %1339 = vmatpush3.msra.mxu0 %v1006_v54  ;;  %v1051_v41 = vld [vmem:[#allocation4 + $0x190] sm:$0xff] }
 0x116   : > { %v1299_v9 = vadd.s32 4294967169, %v541_v60  ;;  %v1307_v11 = vadd.s32 4294967169, %v749_v0  ;;  %v545_v19 = vor.u32 8388608, %v544_v63  ;;  %v753_v20 = vor.u32 8388608, %v752_v1  ;;  %1373 = vmatprep.subr.mxu1 %v1054_v53  ;;  %v1021_v63 = vld [vmem:[#allocation4 + $0xa0] sm:$0xff]  ;;  %v1003_v53 = vld [vmem:[#allocation4 + $0x10] sm:$0xff] }
 0x117   : > { %v645_v22 = vshrl.u32 %v644_v12, 23  ;;  %v1053_v0 = vld [vmem:[#allocation4 + $0x1a0] sm:$0xff]  ;;  %1374 = vmatpush3.msra.mxu1 %v1038_v62  ;;  %1340 = vmatprep.subr.mxu0 %v1021_v63  ;;  %v1035_v54 = vld [vmem:[#allocation4 + $0x110] sm:$0xff]  ;;  %v1018_v62 = vld [vmem:[#allocation4 + $0x88] sm:$0xff] }
 0x118   : > { %v547_v17 = vadd.s32 1, %v1299_v9  ;;  %v755_v21 = vadd.s32 1, %v1307_v11  ;;  %v1709_v34 = vshll.u32 %v545_v19, 8  ;;  %v1713_v36 = vshll.u32 %v753_v20, 8  ;;  %v1037_v11 = vld [vmem:[#allocation4 + $0x120] sm:$0xff]  ;;  %v1052_v19 = vld [vmem:[#allocation4 + $0x198] sm:$0xff]  ;;  %1375 = vmatprep.subr.mxu1 %v1053_v0  ;;  %1341 = vmatpush3.msra.mxu0 %v1005_v10 }
 0x119   : > { %v1303_v27 = vadd.s32 4294967169, %v645_v22  ;;  %1376 = vmatpush3.msra.mxu1 %v1037_v11 }
 0x11a   : > { %vm548_vm0 = vcmp.gt.s32.totalorder %v547_v17, 0  ;;  %vm756_vm1 = vcmp.gt.s32.totalorder %v755_v21, 0  ;;  %1377 = vmatprep.subr.mxu1 %v1052_v19 }
 0x11b   : > { %v549_v26 = vsel %vm548_vm0, %v547_v17, 0  ;;  %v757_v30 = vsel %vm756_vm1, %v755_v21, 0  ;;  %v1727_v60 = vadd.s32 1, %v1303_v27  ;;  %v1020_v17 = vld [vmem:[#allocation4 + $0x98] sm:$0xff]  ;;  %1378 = vmatpush3.msra.mxu1 %v1036_v25 }
 0x11c   : > { %v1705_v8 = vshrl.u32 %v549_v26, 5  ;;  %v551_v29 = vand.u32 31, %v549_v26  ;;  %v1711_v35 = vshrl.u32 %v757_v30, 5  ;;  %v1722_v50 = vand.u32 31, %v757_v30  ;;  %1342 = vmatprep.subr.mxu0 %v1020_v17  ;;  %1379 = vmatprep.subr.mxu1 %v1051_v41 }
 0x11d   : > { %1343 = vmatpush3.msra.mxu0 %v1004_v24  ;;  %1380 = vmatpush3.msra.mxu1 %v1035_v54  ;;  %v1049_v24 = vld [vmem:[#allocation4 + $0x180] sm:$0xff]  ;;  %vm652_vm11 = vcmp.gt.s32.totalorder %v1727_v60, 0 }
 0x11e   : > { %v552_v42 = vsub.s32 32, %v551_v29  ;;  %v554_v47 = vshll.u32 %v1537_v43, %v551_v29  ;;  %v557_v49 = vshll.u32 %v1538_v48, %v551_v29  ;;  %v560_v16 = vshll.u32 %v1539_v7, %v551_v29 }
 0x11f   : > { %v563_v57 = vshll.u32 %v1540_v55, %v551_v29  ;;  %v566_v59 = vshll.u32 %v1541_v58, %v551_v29  ;;  %vm569_vm2 = vcmp.lt.s32.totalorder %v1705_v8, 1  ;;  %vm571_vm3 = vcmp.lt.s32.totalorder %v1705_v8, 3  ;;  %v1019_v29 = vld [vmem:[#allocation4 + $0x90] sm:$0xff] }
 0x120   : > { %v555_v1 = vshrl.u32 %v1538_v48, %v552_v42  ;;  %v558_v2 = vshrl.u32 %v1539_v7, %v552_v42  ;;  %v561_v9 = vshrl.u32 %v1540_v55, %v552_v42  ;;  %v553_v12 = vshrl.u32 %v1537_v43, %v552_v42  ;;  %1344 = vmatprep.subr.mxu0 %v1019_v29 }
 0x121   : > { %v564_v13 = vshrl.u32 %v1541_v58, %v552_v42  ;;  %v567_v15 = vshrl.u32 %v1542_v14, %v552_v42  ;;  %v760_v23 = vsub.s32 32, %v1722_v50  ;;  %vm572_vm4 = vcmp.lt.s32.totalorder %v1705_v8, 4  ;;  %1345 = vmatpush3.msra.mxu0 %v1003_v53 }
 0x122   : > { %v556_v20 = vor.u32 %v555_v1, %v554_v47  ;;  %v559_v21 = vor.u32 %v558_v2, %v557_v49  ;;  %v562_v22 = vor.u32 %v561_v9, %v560_v16  ;;  %v762_v28 = vshll.u32 %v1537_v43, %v1722_v50  ;;  %v1050_v9 = vld [vmem:[#allocation4 + $0x188] sm:$0xff]  ;;  %1346 = vmatprep.subr.mxu0 %v1018_v62 }
 0x123   : > { %v565_v26 = vor.u32 %v564_v13, %v563_v57  ;;  %v568_v27 = vor.u32 %v567_v15, %v566_v59  ;;  %v765_v51 = vshll.u32 %v1538_v48, %v1722_v50  ;;  %vm570_vm5 = vcmp.lt.s32.totalorder %v1705_v8, 2  ;;  %v1002_v8 = vld [vmem:[#allocation4 + $0x8] sm:$0xff]  ;;  %1381 = vmatprep.subr.mxu1 %v1050_v9 }
 0x124   : > { %v573_v30 = vsel %vm569_vm2, %v553_v12, %v556_v20  ;;  %v574_v32 = vsel %vm572_vm4, %v562_v22, 2102212464  ;;  %v577_v33 = vsel %vm569_vm2, %v556_v20, %v559_v21  ;;  %v581_v40 = vsel %vm569_vm2, %v559_v21, %v562_v22  ;;  %v1034_v15 = vld [vmem:[#allocation4 + $0x108] sm:$0xff]  ;;  %1347 = vmatpush3.msra.mxu0 %v1002_v8 }
 0x125   : > { %v575_v42 = vsel %vm571_vm3, %v559_v21, %v574_v32  ;;  %v578_v47 = vsel %vm572_vm4, %v565_v26, 920167782  ;;  %v582_v49 = vsel %vm572_vm4, %v568_v27, 1326507024  ;;  %v763_v59 = vshrl.u32 %v1538_v48, %v760_v23  ;;  %1382 = vmatpush3.msra.mxu1 %v1034_v15 }
 0x126   : > { %v579_v16 = vsel %vm571_vm3, %v562_v22, %v578_v47  ;;  %v583_v57 = vsel %vm571_vm3, %v565_v26, %v582_v49  ;;  %v576_v63 = vsel %vm570_vm5, %v573_v30, %v575_v42  ;;  %v766_v2 = vshrl.u32 %v1539_v7, %v760_v23  ;;  %v1017_v22 = vld [vmem:[#allocation4 + $0x80] sm:$0xff]  ;;  %1383 = vmatprep.subr.mxu1 %v1049_v24 }
 0x127   : > { %v580_v0 = vsel %vm570_vm5, %v577_v33, %v579_v16  ;;  %v584_v1 = vsel %vm570_vm5, %v581_v40, %v583_v57  ;;  %v764_v17 = vor.u32 %v763_v59, %v762_v28  ;;  %v768_v20 = vshll.u32 %v1539_v7, %v1722_v50  ;;  %v1001_v28 = vld [vmem:[#allocation4] sm:$0xff]  ;;  %1348 = vmatprep.subr.mxu0 %v1017_v22 }
 0x128   : > { %v1759_v10 = vmul.u32.u64.low %v1709_v34, %v584_v1  ;;  %v1760_v11 = vmul.u32.u64.high %v1709_v34, %v584_v1, %v1759_v10  ;;  %v1763_v12 = vmul.u32.u64.low %v1709_v34, %v580_v0  ;;  %v1764_v13 = vmul.u32.u64.high %v1709_v34, %v580_v0, %v1763_v12  ;;  %v1033_v30 = vld [vmem:[#allocation4 + $0x100] sm:$0xff]  ;;  %1349 = vmatpush3.msra.mxu0 %v1001_v28  ;;  %v494_v0 = vpop.f32.mrf.mxu1 }
 0x129   : > { %v767_v19 = vor.u32 %v766_v2, %v765_v51  ;;  %v769_v21 = vshrl.u32 %v1540_v55, %v760_v23  ;;  %v771_v25 = vshll.u32 %v1540_v55, %v1722_v50  ;;  %v772_v26 = vshrl.u32 %v1541_v58, %v760_v23  ;;  %1384 = vmatpush3.msra.mxu1 %v1033_v30 }
 0x12a   : > { %v774_v27 = vshll.u32 %v1541_v58, %v1722_v50  ;;  %v775_v29 = vshrl.u32 %v1542_v14, %v760_v23  ;;  %v592_v32 = vmul.u32 %v1709_v34, %v576_v63  ;;  %v761_v33 = vshrl.u32 %v1537_v43, %v760_v23 }
 0x12b   : > { %v770_v40 = vor.u32 %v769_v21, %v768_v20  ;;  %vm777_vm6 = vcmp.lt.s32.totalorder %v1711_v35, 1  ;;  %vm594_vm7 = vc.u32 %v1760_v11, %v1763_v12  ;;  %v595_v41 = vadd.s32 1, %v1764_v13 }
 0x12c   : > { %v773_v50 = vor.u32 %v772_v26, %v771_v25  ;;  %vm778_vm8 = vcmp.lt.s32.totalorder %v1711_v35, 2  ;;  %v776_v42 = vor.u32 %v775_v29, %v774_v27  ;;  %vm779_vm9 = vcmp.lt.s32.totalorder %v1711_v35, 3 }
 0x12d   : > { %vm780_vm10 = vcmp.lt.s32.totalorder %v1711_v35, 4  ;;  %v785_v34 = vsel %vm777_vm6, %v764_v17, %v767_v19  ;;  %v596_v23 = vsel %vm594_vm7, %v595_v41, %v1764_v13  ;;  %v789_v51 = vsel %vm777_vm6, %v767_v19, %v770_v40 }
 0x12e   : > { %v782_v47 = vsel %vm780_vm10, %v770_v40, 2102212464  ;;  %v786_v49 = vsel %vm780_vm10, %v773_v50, 920167782  ;;  %v597_v53 = vadd.s32 %v596_v23, %v592_v32  ;;  %v781_v54 = vsel %vm777_vm6, %v761_v33, %v764_v17 }
 0x12f   : > { %v787_v16 = vsel %vm779_vm9, %v770_v40, %v786_v49  ;;  %v790_v57 = vsel %vm780_vm10, %v776_v42, 1326507024  ;;  %v783_v59 = vsel %vm779_vm9, %v767_v19, %v782_v47  ;;  %v653_v15 = vsel %vm652_vm11, %v1727_v60, 0 }
 0x130   : > { %v788_v62 = vsel %vm778_vm8, %v785_v34, %v787_v16  ;;  %v791_v63 = vsel %vm779_vm9, %v773_v50, %v790_v57  ;;  %v598_v1 = vadd.s32 536870912, %v597_v53  ;;  %v532_v17 = vrot.slane %v1718_v39, %v1647_v6 }
 0x131   : > { %v792_v2 = vsel %vm778_vm8, %v789_v51, %v791_v63  ;;  %v1798_v9 = vmul.u32.u64.low %v1713_v36, %v788_v62  ;;  %v1799_v10 = vmul.u32.u64.high %v1713_v36, %v788_v62, %v1798_v9  ;;  %v784_v20 = vsel %vm778_vm8, %v781_v54, %v783_v59 }
 0x132   : > { %v1803_v13 = vmul.u32.u64.low %v1713_v36, %v792_v2  ;;  %v1804_v8 = vmul.u32.u64.high %v1713_v36, %v792_v2, %v1803_v13  ;;  %v1809_v19 = vshrl.u32 %v598_v1, 30  ;;  %v655_v21 = vand.u32 31, %v653_v15 }
 0x133   : > { %v1816_v22 = vadd.f32 %v494_v0, %v354_v31  ;;  %v803_v25 = vadd.s32 1, %v1799_v10  ;;  %v800_v60 = vmul.u32 %v1713_v36, %v784_v20  ;;  %v641_v26 = vand.u32 2147483647, %v1693_v61 }
 0x134   : > { %v600_v24 = vshll.u32 %v1809_v19, 30  ;;  %vm802_vm12 = vc.u32 %v1804_v8, %v1798_v9  ;;  %v656_v6 = vsub.s32 32, %v655_v21  ;;  %v658_v41 = vshll.u32 %v1537_v43, %v655_v21 }
 0x135   : > { %v804_v35 = vsel %vm802_vm12, %v803_v25, %v1799_v10  ;;  %v1828_v4 = vmul.f32 %v532_v17, %v1816_v22  ;;  %v648_v30 = vand.u32 8388607, %v641_v26  ;;  %v661_v50 = vshll.u32 %v1538_v48, %v655_v21 }
 0x136   : > { %v1823_v39 = vsub.s32 %v597_v53, %v600_v24  ;;  %v805_v18 = vadd.s32 %v804_v35, %v800_v60  ;;  %v659_v29 = vshrl.u32 %v1538_v48, %v656_v6  ;;  %v662_v36 = vshrl.u32 %v1539_v7, %v656_v6 }
 0x137   : > { %v668_v32 = vshrl.u32 %v1541_v58, %v656_v6  ;;  %v852_v33 = vand.u32 2139095040, %v1828_v4  ;;  %v665_v42 = vshrl.u32 %v1540_v55, %v656_v6  ;;  %v654_v23 = vshrl.u32 %v653_v15, 5 }
 0x138   : > { %v603_v31 = vsub.s32 0, %v1823_v39  ;;  %v806_v27 = vadd.s32 536870912, %v805_v18  ;;  %v667_v47 = vshll.u32 %v1540_v55, %v655_v21  ;;  %v671_v49 = vshrl.u32 %v1542_v14, %v656_v6 }
 0x139   : > { %v660_v53 = vor.u32 %v659_v29, %v658_v41  ;;  %v663_v54 = vor.u32 %v662_v36, %v661_v50  ;;  %v664_v16 = vshll.u32 %v1539_v7, %v655_v21  ;;  %v670_v62 = vshll.u32 %v1541_v58, %v655_v21 }
 0x13a   : > { %v1300_v28 = vmin.u32 %v603_v31, %v1823_v39  ;;  %v1838_v40 = vshrl.u32 %v806_v27, 30  ;;  %v669_v59 = vor.u32 %v668_v32, %v667_v47  ;;  %v649_v1 = vor.u32 8388608, %v648_v30 }
 0x13b   : > { %v666_v0 = vor.u32 %v665_v42, %v664_v16  ;;  %v672_v2 = vor.u32 %v671_v49, %v670_v62  ;;  %vm673_vm14 = vcmp.lt.s32.totalorder %v654_v23, 1  ;;  %vm676_vm15 = vcmp.lt.s32.totalorder %v654_v23, 4 }
 0x13c   : > { %v605_v34 = vclz %v1300_v28  ;;  %v808_v51 = vshll.u32 %v1838_v40, 30  ;;  %v681_v13 = vsel %vm673_vm14, %v660_v53, %v663_v54  ;;  %v853_v15 = vshrl.u32 %v852_v33, 23 }
 0x13d   : > { %v657_v20 = vshrl.u32 %v1537_v43, %v656_v6  ;;  %vm675_vm0 = vcmp.lt.s32.totalorder %v654_v23, 3  ;;  %v682_v24 = vsel %vm676_vm15, %v669_v59, 920167782  ;;  %vm674_vm1 = vcmp.lt.s32.totalorder %v654_v23, 2 }
 0x13e   : > { %v1301_v57 = vadd.s32 4294967294, %v605_v34  ;;  %v1848_v63 = vsub.s32 %v805_v18, %v808_v51  ;;  %v678_v21 = vsel %vm676_vm15, %v666_v0, 2102212464  ;;  %v683_v60 = vsel %vm675_vm0, %v666_v0, %v682_v24 }
 0x13f   : > { %v684_v18 = vsel %vm674_vm1, %v681_v13, %v683_v60  ;;  %v685_v31 = vsel %vm673_vm14, %v663_v54, %v666_v0  ;;  %v686_v27 = vsel %vm676_vm15, %v672_v2, 1326507024  ;;  %v689_v29 = vshll.u32 %v649_v1, 8 }
 0x140   : > { %vm1302_vm13 = vcmp.lt.s32.totalorder %v1301_v57, 0  ;;  %v811_v25 = vsub.s32 0, %v1848_v63  ;;  %v1311_v36 = vadd.s32 4294967169, %v853_v15  ;;  %v677_v30 = vsel %vm673_vm14, %v657_v20, %v660_v53 }
 0x141   : > { %v608_v10 = vsel %vm1302_vm13, 0, %v1301_v57  ;;  %v679_v32 = vsel %vm675_vm0, %v663_v54, %v678_v21  ;;  %v687_v6 = vsel %vm675_vm0, %v669_v59, %v686_v27  ;;  %v593_v34 = vadd.s32 %v1763_v12, %v1760_v11 }
 0x142   : > { %v613_v17 = vsub.s32 4294967266, %v608_v10  ;;  %v609_v28 = vsub.s32 32, %v608_v10  ;;  %v1308_v33 = vmin.u32 %v811_v25, %v1848_v63  ;;  %v688_v41 = vsel %vm674_vm1, %v685_v31, %v687_v6 }
 0x143   : > { %v1858_v50 = vmul.u32.u64.low %v689_v29, %v684_v18  ;;  %v1859_v42 = vmul.u32.u64.high %v689_v29, %v684_v18, %v1858_v50  ;;  %v1864_v49 = vmul.u32.u64.low %v689_v29, %v688_v41  ;;  %v1865_v51 = vmul.u32.u64.high %v689_v29, %v688_v41, %v1864_v49 }
 0x144   : > { %v614_v35 = vadd.s32 127, %v613_v17  ;;  %v680_v16 = vsel %vm674_vm1, %v677_v30, %v679_v32  ;;  %v859_v53 = vadd.s32 1, %v1311_v36  ;;  %v611_v54 = vshrl.u32 %v593_v34, %v609_v28 }
 0x145   : > { %v610_v57 = vshll.u32 %v1823_v39, %v608_v10  ;;  %v813_v59 = vclz %v1308_v33  ;;  %v699_v62 = vadd.s32 1, %v1859_v42  ;;  %v696_v1 = vmul.u32 %v689_v29, %v680_v16 }
 0x146   : > { %v615_v47 = vshll.u32 %v614_v35, 23  ;;  %vm698_vm2 = vc.u32 %v1865_v51, %v1858_v50  ;;  %vm860_vm3 = vcmp.gt.s32.totalorder %v859_v53, 0  ;;  %v849_v23 = vand.u32 2147483647, %v1828_v4 }
 0x147   : > { %v700_v11 = vsel %vm698_vm2, %v699_v62, %v1859_v42  ;;  %v861_v12 = vsel %vm860_vm3, %v859_v53, 0  ;;  %v612_v2 = vor.u32 %v611_v54, %v610_v57  ;;  %v1309_v20 = vadd.s32 4294967294, %v813_v59 }
 0x148   : > { %v616_v0 = vor.u32 4788187, %v615_v47  ;;  %v701_v13 = vadd.s32 %v700_v11, %v696_v1  ;;  %v863_v15 = vand.u32 31, %v861_v12  ;;  %v856_v21 = vand.u32 8388607, %v849_v23 }
 0x149   : > { %v619_v24 = vcvt.s32.f32 %v612_v2  ;;  %vm1310_vm4 = vcmp.lt.s32.totalorder %v1309_v20, 0  ;;  %v862_v33 = vshrl.u32 %v861_v12, 5  ;;  %vm1896_vm5 = vcmp.le.f32.partialorder %v537_v52, 0.7853982 }
 0x14a   : > { %v617_v17 = vand.u32 2147483647, %v616_v0  ;;  %v702_v39 = vadd.s32 536870912, %v701_v13  ;;  %v864_v10 = vsub.s32 32, %v863_v15  ;;  %v866_v29 = vshll.u32 %v1537_v43, %v863_v15 }
 0x14b   : > { %v869_v36 = vshll.u32 %v1538_v48, %v863_v15  ;;  %v875_v28 = vshll.u32 %v1540_v55, %v863_v15  ;;  %v857_v6 = vor.u32 8388608, %v856_v21  ;;  %v872_v41 = vshll.u32 %v1539_v7, %v863_v15 }
 0x14c   : > { %v1874_v25 = vshrl.u32 %v702_v39, 30  ;;  %v867_v60 = vshrl.u32 %v1538_v48, %v864_v10  ;;  %v870_v35 = vshrl.u32 %v1539_v7, %v864_v10  ;;  %v620_v18 = vmul.f32 %v619_v24, %v617_v17 }
 0x14d   : > { %v873_v27 = vshrl.u32 %v1540_v55, %v864_v10  ;;  %v876_v30 = vshrl.u32 %v1541_v58, %v864_v10  ;;  %v879_v49 = vshrl.u32 %v1542_v14, %v864_v10  ;;  %v1890_v16 = vsel %vm1310_vm4, 0, %v1309_v20 }
 0x14e   : > { %v704_v31 = vshll.u32 %v1874_v25, 30  ;;  %v868_v42 = vor.u32 %v867_v60, %v866_v29  ;;  %v871_v34 = vor.u32 %v870_v35, %v869_v36  ;;  %v878_v55 = vshll.u32 %v1541_v58, %v863_v15 }
 0x14f   : > { %v877_v47 = vor.u32 %v876_v30, %v875_v28  ;;  %v874_v48 = vor.u32 %v873_v27, %v872_v41  ;;  %vm539_vm6 = vcmp.lt.s32.totalorder %v1680_v44, 0  ;;  %v621_v7 = vxor.u32 2147483648, %v620_v18 }
 0x150   : > { %v1886_v32 = vsub.s32 %v701_v13, %v704_v31  ;;  %v880_v59 = vor.u32 %v879_v49, %v878_v55  ;;  %vm881_vm7 = vcmp.lt.s32.totalorder %v862_v33, 1  ;;  %vm884_vm8 = vcmp.lt.s32.totalorder %v862_v33, 4 }
 0x151   : > { %v821_v14 = vsub.s32 4294967266, %v1890_v16  ;;  %v889_v62 = vsel %vm881_vm7, %v868_v42, %v871_v34  ;;  %v890_v0 = vsel %vm884_vm8, %v877_v47, 920167782  ;;  %v897_v58 = vshll.u32 %v857_v6, 8 }
 0x152   : > { %v707_v53 = vsub.s32 0, %v1886_v32  ;;  %v865_v52 = vshrl.u32 %v1537_v43, %v864_v10  ;;  %vm883_vm9 = vcmp.lt.s32.totalorder %v862_v33, 3  ;;  %v886_v11 = vsel %vm884_vm8, %v874_v48, 2102212464 }
 0x153   : > { %v622_v12 = vsel %vm539_vm6, %v621_v7, %v620_v18  ;;  %vm882_vm10 = vcmp.lt.s32.totalorder %v862_v33, 2  ;;  %v891_v2 = vsel %vm883_vm9, %v874_v48, %v890_v0  ;;  %v893_v13 = vsel %vm881_vm7, %v871_v34, %v874_v48 }
 0x154   : > { %v1304_v57 = vmin.u32 %v707_v53, %v1886_v32  ;;  %v885_v17 = vsel %vm881_vm7, %v865_v52, %v868_v42  ;;  %v892_v20 = vsel %vm882_vm10, %v889_v62, %v891_v2  ;;  %v894_v39 = vsel %vm884_vm8, %v880_v59, 1326507024 }
 0x155   : > { %v887_v24 = vsel %vm883_vm9, %v871_v34, %v886_v11  ;;  %v895_v21 = vsel %vm883_vm9, %v877_v47, %v894_v39  ;;  %v1910_v60 = vmul.u32.u64.low %v897_v58, %v892_v20  ;;  %v1911_v35 = vmul.u32.u64.high %v897_v58, %v892_v20, %v1910_v60 }
 0x156   : > { %v709_v1 = vclz %v1304_v57  ;;  %v817_v43 = vsub.s32 32, %v1890_v16  ;;  %v822_v10 = vadd.s32 127, %v821_v14  ;;  %v896_v18 = vsel %vm882_vm10, %v893_v13, %v895_v21 }
 0x157   : > { %v697_v31 = vadd.s32 %v1858_v50, %v1865_v51  ;;  %v1918_v29 = vmul.u32.u64.low %v897_v58, %v896_v18  ;;  %v1919_v36 = vmul.u32.u64.high %v897_v58, %v896_v18, %v1918_v29  ;;  %v625_v28 = vsel %vm1896_vm5, %v1680_v44, %v622_v12 }
 0x158   : > { %v1305_v15 = vadd.s32 4294967294, %v709_v1  ;;  %v888_v41 = vsel %vm882_vm10, %v885_v17, %v887_v24  ;;  %v801_v42 = vadd.s32 %v1798_v9, %v1804_v8  ;;  %v907_v34 = vadd.s32 1, %v1911_v35 }
 0x159   : > { %v823_v47 = vshll.u32 %v822_v10, 23  ;;  %1444 = vcosq.f32 %v625_v28  ;;  %v904_v48 = vmul.u32 %v897_v58, %v888_v41  ;;  %vm906_vm12 = vc.u32 %v1919_v36, %v1910_v60 }
 0x15a   : > { %vm1306_vm11 = vcmp.lt.s32.totalorder %v1305_v15, 0  ;;  %v819_v53 = vshrl.u32 %v801_v42, %v817_v43  ;;  %1446 = vsinq.f32 %v625_v28  ;;  %v908_v7 = vsel %vm906_vm12, %v907_v34, %v1911_v35 }
 0x15b   : > { %v712_v27 = vsel %vm1306_vm11, 0, %v1305_v15  ;;  %v623_v9 = vsub.s32 4, %v1809_v19  ;;  %v909_v8 = vadd.s32 %v908_v7, %v904_v48  ;;  %v818_v57 = vshll.u32 %v1848_v63, %v1890_v16 }
 0x15c   : > { %v713_v30 = vsub.s32 32, %v712_v27  ;;  %v717_v6 = vsub.s32 4294967266, %v712_v27  ;;  %v714_v50 = vshll.u32 %v1886_v32, %v712_v27  ;;  %v824_v32 = vor.u32 4788187, %v823_v47 }
 0x15d   : > { %v910_v14 = vadd.s32 536870912, %v909_v8  ;;  %v820_v62 = vor.u32 %v819_v53, %v818_v57  ;;  %v624_v1 = vsel %vm539_vm6, %v623_v9, %v1809_v19  ;;  %v727_v15 = vsub.s32 4, %v1874_v25 }
 0x15e   : > { %v715_v51 = vshrl.u32 %v697_v31, %v713_v30  ;;  %v718_v49 = vadd.s32 127, %v717_v6  ;;  %v825_v11 = vand.u32 2147483647, %v824_v32  ;;  %v626_v13 = vsel %vm1896_vm5, 0, %v624_v1  ;;  %v1460_v1 = vld [vmem:[%s2033_s2] sm:$0x77] }
 0x15f   : > { %v1938_v52 = vshrl.u32 %v910_v14, 30  ;;  %v827_v63 = vcvt.s32.f32 %v820_v62  ;;  %vm643_vm13 = vcmp.lt.s32.totalorder %v1693_v61, 0  ;;  %vm1947_vm14 = vcmp.le.f32.partialorder %v641_v26, 0.7853982 }
 0x160   : > { %v716_v55 = vor.u32 %v715_v51, %v714_v50  ;;  %v719_v33 = vshll.u32 %v718_v49, 23  ;;  %v630_v24 = vadd.s32 3, %v626_v13  ;;  %v728_v43 = vsel %vm643_vm13, %v727_v15, %v1874_v25 }
 0x161   : > { %v912_v2 = vshll.u32 %v1938_v52, 30  ;;  %v828_v20 = vmul.f32 %v827_v63, %v825_v11  ;;  %v730_v26 = vsel %vm1947_vm14, 0, %v728_v43  ;;  %vm747_vm15 = vcmp.lt.s32.totalorder %v1683_v45, 0 }
 0x162   : > { %v720_v59 = vor.u32 4788187, %v719_v33  ;;  %v723_v58 = vcvt.s32.f32 %v716_v55  ;;  %v631_v27 = vand.u32 3, %v630_v24  ;;  %v734_v42 = vadd.s32 3, %v730_v26 }
 0x163   : > { %v913_v17 = vsub.s32 %v909_v8, %v912_v2  ;;  %v829_v31 = vxor.u32 2147483648, %v828_v20  ;;  %v1961_v25 = vsub.s32 2, %v1636_v3  ;;  %vm1965_vm3 = vcmp.le.f32.partialorder %v745_v56, 0.7853982 }
 0x164   : > { %v721_v0 = vand.u32 2147483647, %v720_v59  ;;  %vm633_vm0 = vcmp.eq.s32.totalorder %v631_v27, 0  ;;  %vm636_vm1 = vcmp.eq.s32.totalorder %v631_v27, 2  ;;  %v905_v53 = vadd.s32 %v1910_v60, %v1919_v36 }
 0x165   : > { %v915_v21 = vsub.s32 0, %v913_v17  ;;  %v830_v41 = vsel %vm747_vm15, %v829_v31, %v828_v20  ;;  %vm632_vm4 = vcmp.lt.s32.totalorder %v631_v27, 2  ;;  %v735_v33 = vand.u32 3, %v734_v42 }
 0x166   : > { %v724_v12 = vmul.f32 %v723_v58, %v721_v0  ;;  %v1445_v35 = vpop.eup %1444  ;;  %v833_v49 = vsel %vm1965_vm3, %v1683_v45, %v830_v41  ;;  %v963_v7 = vsub.s32 6, %v1636_v3  ;;  %v960_v32 = vrot.slane %v1644_v5, %v1961_v25 }
 0x167   : > { %v1447_v10 = vpop.eup %1446  ;;  %v1312_v18 = vmin.u32 %v915_v21, %v913_v17  ;;  %v637_v30 = vxor.u32 2147483648, %v1445_v35  ;;  %vm629_vm5 = vweird.f32 %v1680_v44  ;;  %v831_v0 = vsub.s32 4, %v1838_v40 }
 0x168   : > { %v725_v16 = vxor.u32 2147483648, %v724_v12  ;;  %v634_v28 = vxor.u32 2147483648, %v1447_v10  ;;  %v964_v11 = vrot.slane %v1460_v1, %v963_v7  ;;  %vm740_vm6 = vcmp.eq.s32.totalorder %v735_v33, 2 }
 0x169   : > { %v917_v29 = vclz %v1312_v18  ;;  %v638_v47 = vsel %vm636_vm1, %v637_v30, %v1447_v10  ;;  %v980_v44 = vrot.slane %v960_v32, %v1961_v25  ;;  %vm736_vm7 = vcmp.lt.s32.totalorder %v735_v33, 2 }
 0x16a   : > { %v726_v39 = vsel %vm643_vm13, %v725_v16, %v724_v12  ;;  %v635_v34 = vsel %vm633_vm0, %v1445_v35, %v634_v28  ;;  %vm737_vm8 = vcmp.eq.s32.totalorder %v735_v33, 0  ;;  %vm733_vm9 = vweird.f32 %v1693_v61 }
 0x16b   : > { %v729_v54 = vsel %vm1947_vm14, %v1693_v61, %v726_v39  ;;  %v1313_v6 = vadd.s32 4294967294, %v917_v29  ;;  %v639_v9 = vsel %vm632_vm4, %v635_v34, %v638_v47  ;;  %v984_v19 = vrot.slane %v964_v11, %v1961_v25 }
 0x16c   : > { %1448 = vcosq.f32 %v729_v54  ;;  %v640_v62 = vsel %vm629_vm5, nan, %v639_v9  ;;  %vm851_vm10 = vcmp.lt.s32.totalorder %v1828_v4, 0  ;;  %v935_v18 = vsub.s32 4, %v1938_v52 }
 0x16d   : > { %1450 = vsinq.f32 %v729_v54  ;;  %vm1314_vm2 = vcmp.lt.s32.totalorder %v1313_v6, 0  ;;  %v953_v13 = vmul.f32 %v640_v62, %v640_v62  ;;  %vm1996_vm11 = vcmp.le.f32.partialorder %v849_v23, 0.7853982 }
 0x16e   : > { %v920_v51 = vsel %vm1314_vm2, 0, %v1313_v6  ;;  %1452 = vcosq.f32 %v833_v49  ;;  %v936_v6 = vsel %vm851_vm10, %v935_v18, %v1938_v52  ;;  %v1461_v52 = vld [vmem:[%s2033_s2 + $0x8] sm:$0x77] }
 0x16f   : > { %v921_v48 = vsub.s32 32, %v920_v51  ;;  %v925_v55 = vsub.s32 4294967266, %v920_v51  ;;  %v922_v8 = vshll.u32 %v913_v17, %v920_v51  ;;  %1454 = vsinq.f32 %v833_v49 }
 0x170   : > { %v832_v17 = vsel %vm747_vm15, %v831_v0, %v1838_v40  ;;  %v993_v21 = vmul.f32 %v980_v44, %v953_v13  ;;  %vm837_vm15 = vweird.f32 %v1683_v45  ;;  %v972_v9 = vrot.slane %v1461_v52, %v963_v7 }
 0x171   : > { %v923_v56 = vshrl.u32 %v905_v53, %v921_v48  ;;  %v926_v57 = vadd.s32 127, %v925_v55  ;;  %v834_v35 = vsel %vm1965_vm3, 0, %v832_v17  ;;  %v968_v53 = vrot.slane %v1461_v52, %v1961_v25 }
 0x172   : > { %v838_v31 = vadd.s32 3, %v834_v35  ;;  %v997_v28 = vadd.f32 %v993_v21, %v1675_v37  ;;  %vm941_vm3 = vweird.f32 %v1828_v4 }
 0x173   : > { %v924_v14 = vor.u32 %v923_v56, %v922_v8  ;;  %v927_v60 = vshll.u32 %v926_v57, 23  ;;  %v988_v32 = vrot.slane %v968_v53, %v1961_v25 }
 0x174   : > { %v839_v23 = vand.u32 3, %v838_v31 }
 0x175   : > { %v928_v12 = vor.u32 4788187, %v927_v60  ;;  %v931_v15 = vcvt.s32.f32 %v924_v14  ;;  %v992_v14 = vrot.slane %v972_v9, %v1961_v25 }
 0x176   : > { %vm841_vm12 = vcmp.eq.s32.totalorder %v839_v23, 0  ;;  %vm844_vm13 = vcmp.eq.s32.totalorder %v839_v23, 2  ;;  %vm840_vm14 = vcmp.lt.s32.totalorder %v839_v23, 2 }
 0x177   : > { %v929_v16 = vand.u32 2147483647, %v928_v12 }
 0x179   : > { %v1449_v59 = vpop.eup %1448  ;;  %v932_v24 = vmul.f32 %v931_v15, %v929_v16 }
 0x17a   : > { %v1451_v36 = vpop.eup %1450  ;;  %v741_v58 = vxor.u32 2147483648, %v1449_v59 }
 0x17b   : > { %v738_v5 = vxor.u32 2147483648, %v1451_v36  ;;  %v933_v43 = vxor.u32 2147483648, %v932_v24  ;;  %v1453_v29 = vpop.eup %1452 }
 0x17c   : > { %v742_v2 = vsel %vm740_vm6, %v741_v58, %v1451_v36  ;;  %v1455_v30 = vpop.eup %1454  ;;  %v845_v42 = vxor.u32 2147483648, %v1453_v29 }
 0x17d   : > { %v739_v63 = vsel %vm737_vm8, %v1449_v59, %v738_v5  ;;  %v934_v40 = vsel %vm851_vm10, %v933_v43, %v932_v24  ;;  %v842_v41 = vxor.u32 2147483648, %v1455_v30 }
 0x17e   : > { %v743_v20 = vsel %vm736_vm7, %v739_v63, %v742_v2  ;;  %v937_v26 = vsel %vm1996_vm11, %v1828_v4, %v934_v40  ;;  %v846_v50 = vsel %vm844_vm13, %v845_v42, %v1455_v30  ;;  %v1315_v4 = vld [vmem:[%s2035_s4] ss:$0 sm:$0xff] }
 0x17f   : > { %v744_v39 = vsel %vm733_vm9, nan, %v743_v20  ;;  %1456 = vcosq.f32 %v937_v26  ;;  %v843_v47 = vsel %vm841_vm12, %v1453_v29, %v842_v41 }
 0x180   : > { %v954_v54 = vmul.f32 %v744_v39, %v744_v39  ;;  %1458 = vsinq.f32 %v937_v26  ;;  %v847_v37 = vsel %vm840_vm14, %v843_v47, %v846_v50 }
 0x181   : > { %v848_v55 = vsel %vm837_vm15, nan, %v847_v37 }
 0x182   : > { %v994_v10 = vmul.f32 %v984_v19, %v954_v54  ;;  %v955_v57 = vmul.f32 %v848_v55, %v848_v55 }
 0x184   : > { %v998_v27 = vadd.f32 %v994_v10, %v1685_v46  ;;  %v938_v46 = vsel %vm1996_vm11, 0, %v936_v6  ;;  %v995_v62 = vmul.f32 %v988_v32, %v955_v57 }
 0x185   : > { %v942_v34 = vadd.s32 3, %v938_v46 }
 0x186   : > { %1136 = vmatprep.mubr.f32.mxu0 %v998_v27  ;;  %v999_v0 = vadd.f32 %v995_v62, %v1677_v38 }
 0x187   : > { %1137 = vmatmul.mubr.f32.vlgmr.msra.gmra.mxu0 %v997_v28  ;;  %v943_v51 = vand.u32 3, %v942_v34 }
 0x189   : > { %vm948_vm0 = vcmp.eq.s32.totalorder %v943_v51, 2  ;;  %vm945_vm1 = vcmp.eq.s32.totalorder %v943_v51, 0  ;;  %vm944_vm2 = vcmp.lt.s32.totalorder %v943_v51, 2 }
 0x18c   : > { %v1457_v49 = vpop.eup %1456 }
 0x18d   : > { %v1459_v48 = vpop.eup %1458  ;;  %v949_v33 = vxor.u32 2147483648, %v1457_v49 }
 0x18e   : > { %v946_v8 = vxor.u32 2147483648, %v1459_v48 }
 0x18f   : > { %v950_v56 = vsel %vm948_vm0, %v949_v33, %v1459_v48 }
 0x190   : > { %v947_v45 = vsel %vm945_vm1, %v1457_v49, %v946_v8 }
 0x191   : > { %v951_v59 = vsel %vm944_vm2, %v947_v45, %v950_v56 }
 0x192   : > { %v952_v60 = vsel %vm941_vm3, nan, %v951_v59 }
 0x193   : > { %v956_v36 = vmul.f32 %v952_v60, %v952_v60 }
 0x195   : > { %v996_v3 = vmul.f32 %v992_v14, %v956_v36 }
 0x197   : > { %v1000_v7 = vadd.f32 %v996_v3, %v1816_v22 }
 0x199   : > { %1206 = vmatprep.mubr.f32.mxu1 %v1000_v7 }
 0x19a   : > { %1207 = vmatmul.mubr.f32.vlgmr.msra.gmra.mxu1 %v999_v0 }
 0x247   : > { %v1350_v58 = vpop.f32.mrf.mxu0 }
 0x249   : > { %v1351_v1 = vpop.f32.mrf.mxu0 }
 0x24a   : > { %v1352_v11 = vadd.f32 %v1351_v1, %v1350_v58 }
 0x24c   : > { %v1139_v25 = vadd.f32 %v1352_v11, %v1315_v4 }
 0x25a   : > { %v1385_v5 = vpop.f32.mrf.mxu1 }
 0x25c   : > { %v1386_v12 = vpop.f32.mrf.mxu1 }
 0x25d   : > { %v1387_v44 = vadd.f32 %v1386_v12, %v1385_v5 }
 0x25f   : > { %v1209_v22 = vadd.f32 %v1387_v44, %v1139_v25 }
 0x261   : > { %1212 = vst [vmem:[%s249_s29] sm:$0xff] %v1209_v22 }
 0x262 PF: > { %s17_s18 = sadd.s32 1, %s1528_s18  }
 0x263   : > { %p14_p3 = scmp.ge.s32.totalorder %s17_s18, 4  }
 0x265   :  { %16 = sbr.rel (!%p14_p3) target bundleno = 2 (0x2), region = 79 }
 0x26a   :  { %1232 = vsyncpa [#allocation3], 1 }
 0x26b   :  { %1234 = vsyncpa [#allocation3 + $0x1], 1 }
 0x26c   :  { %1235 = vsyncpa [#allocation5], 1 }

</bundles_post_ra>
